<compile_context>
chip_gen: v7x
topology: tpu7x:2x2x1
jax: 0.10.0
libtpu: 0.0.40
codegen_flags: <defaults>
</compile_context>

<pallas_src>
import functools

import jax
import jax.numpy as jnp
from jax.experimental import pallas as pl
from jax.experimental.pallas import tpu as pltpu


# ----------------------------------------------------------------------------
# Pallas kernel: weight computation + alpha compositing (the hot path)
# ----------------------------------------------------------------------------
def _composite_kernel(idx_ref, dists_ref, gat_ref, out_ref, *, inv_r2, num_k,
                      num_c):
    idx = idx_ref[...]                          # (K, TM) int32, -1 = empty slot
    d2 = dists_ref[...]                         # (K, TM) f32, squared NDC dist
    tm = idx.shape[1]

    # weights = 1 - dists^2 / r^2 (VPU); empty slots (idx < 0) contribute 0.
    alpha = jnp.where(idx >= 0, 1.0 - d2 * inv_r2, 0.0)     # (K, TM)

    # Fused front-to-back blend: w_k = prod_{j<k}(1 - a_j) * a_k.
    # Single loop keeps only cum / acc / current rows live (low vreg pressure).
    cum = jnp.ones((1, tm), jnp.float32)
    acc = jnp.zeros((num_c, tm), jnp.float32)
    # TODO(synk): for points_per_pixel >> 8 switch this unrolled loop to
    # lax.fori_loop(..., unroll=8) to bound code size / vreg pressure.
    for k in range(num_k):
        a_k = alpha[k:k + 1, :]                 # (1, TM)
        g_k = gat_ref[k]                        # (Co, TM)  pre-gathered feat[idx_k]
        acc = acc + (cum * a_k) * g_k
        cum = cum * (1.0 - a_k)

    out_ref[...] = acc


def alpha_composite(idx, dists, feat, radius, *, out_channels=3, tile_m=2048):
    """AlphaCompositor: out = sum_k prod_{j<k}(1 - a_j) * a_k * feat[idx_k]."""
    N, H, W, K = idx.shape
    P, C = feat.shape
    Co = min(out_channels, C)
    M = N * H * W

    # Pixel-flat views (one reshape each; no scatter round-trips).
    idx_flat = idx.reshape(M, K).astype(jnp.int32)           # (M, K)
    d_flat = dists.reshape(M, K).astype(jnp.float32)         # (M, K)

    # Gather-then-blend: one plain XLA gather here; the kernel never touches P.
    feat_rgb = feat[:, :Co].astype(jnp.float32)              # (P, Co)
    gathered = jnp.take(feat_rgb, jnp.maximum(idx_flat, 0), axis=0)  # (M, K, Co)

    # Lane-dense transposed layouts, padded once along the pixel axis.
    tile_m = 128 * pl.cdiv(min(tile_m, 128 * pl.cdiv(M, 128)), 128)
    m_pad = tile_m * pl.cdiv(M, tile_m)
    pad = m_pad - M
    idx_t = jnp.pad(idx_flat.T, ((0, 0), (0, pad)), constant_values=-1)
    d_t = jnp.pad(d_flat.T, ((0, 0), (0, pad)))
    gat_t = jnp.pad(gathered.transpose(1, 2, 0), ((0, 0), (0, 0), (0, pad)))

    m_blocks = m_pad // tile_m

    kernel = functools.partial(
        _composite_kernel,
        inv_r2=float(1.0 / (radius * radius)), num_k=K, num_c=Co)

    # VMEM budget: tiny streaming tiles (double-buffered); safe on every
    # generation (v5e 16 MiB default scoped, v7x 64 MiB physical).
    word = 4
    vmem_est = word * (
        2 * 2 * K * tile_m            # idx + dists tiles, double buffered
        + 2 * K * 8 * tile_m          # gathered tile (Co sublane-padded to 8)
        + 2 * 8 * tile_m)             # output tile
    vmem_limit = int(min(max(4 * vmem_est, 16 << 20), 32 << 20))

    cost = pl.CostEstimate(
        flops=(2 * Co + 5) * K * m_pad,
        transcendentals=0,
        bytes_accessed=word * (2 * K * m_pad + K * Co * m_pad + Co * m_pad))

    out_t = pl.pallas_call(
        kernel,
        out_shape=jax.ShapeDtypeStruct((Co, m_pad), jnp.float32),
        grid=(m_blocks,),
        in_specs=[
            pl.BlockSpec((K, tile_m), lambda i: (0, i)),          # idx tile
            pl.BlockSpec((K, tile_m), lambda i: (0, i)),          # dists tile
            pl.BlockSpec((K, Co, tile_m), lambda i: (0, 0, i)),   # gathered feats
        ],
        out_specs=pl.BlockSpec((Co, tile_m), lambda i: (0, i)),
        compiler_params=pltpu.CompilerParams(
            dimension_semantics=("parallel",),
            vmem_limit_bytes=vmem_limit),
        cost_estimate=cost,
    )(idx_t, d_t, gat_t)

    return out_t[:, :M].T.reshape(N, H, W, Co)


# ----------------------------------------------------------------------------
# Simple deterministic point rasterizer (the injected `rasterizer` dependency)
# ----------------------------------------------------------------------------
# TODO(synk): pytorch3d's bin-based point rasterizer (per-pixel z-sorted top-K
# search) has no clean Pallas equivalent; a brute-force NDC rasterizer with
# lax.top_k stands in for it in plain JAX (it only produces the fragments).
def simple_rasterize(points, image_size, radius, points_per_pixel):
    # points: (N, P, 3) with xy in NDC [-1, 1] and z = depth (> 0).
    N, P, _ = points.shape
    coords = 1.0 - 2.0 * (jnp.arange(image_size) + 0.5) / image_size
    py = coords[:, None]                                  # (H, 1)
    px = coords[None, :]                                  # (1, W)

    def raster_one(pts, offset):
        dx = px[..., None] - pts[None, None, :, 0]        # (H, W, P)
        dy = py[..., None] - pts[None, None, :, 1]
        d2 = dx * dx + dy * dy
        z = pts[:, 2]
        inside = (d2 <= radius * radius) & (z[None, None, :] > 0.0)
        key = jnp.where(inside, z[None, None, :], jnp.inf)
        neg_z, top_idx = jax.lax.top_k(-key, points_per_pixel)    # closest-in-depth K
        zbuf = -neg_z
        valid = jnp.isfinite(zbuf)
        idx = jnp.where(valid, top_idx + offset, -1).astype(jnp.int32)  # packed index
        dd = jnp.take_along_axis(d2, top_idx, axis=-1)
        dists = jnp.where(valid, dd, -1.0).astype(jnp.float32)
        zbuf = jnp.where(valid, zbuf, -1.0).astype(jnp.float32)
        return idx, zbuf, dists

    offsets = jnp.arange(N) * P
    return jax.vmap(raster_one)(points, offsets)          # each (N, H, W, K)


# ----------------------------------------------------------------------------
# PointsRendererCustom.forward
# ----------------------------------------------------------------------------
def points_renderer_forward(points, features_packed, *, image_size, radius,
                            points_per_pixel):
    idx, zbuf, dists = simple_rasterize(points, image_size, radius,
                                        points_per_pixel)
    # Composite only the 3 RGB channels inside the kernel (the forward discards
    # the rest anyway) -> smaller output DMA, no extra HBM slice pass.
    rgb = alpha_composite(idx, dists, features_packed, radius, out_channels=3)
    return rgb, zbuf, idx


# ----------------------------------------------------------------------------
# Pure-JAX reference for the in-kernel compute (weights + alpha compositing)
# ----------------------------------------------------------------------------
def composite_ref(idx, dists, feat, radius):
    w = 1.0 - dists / (radius * radius)
    alpha = jnp.where(idx >= 0, w, 0.0)                          # (N,H,W,K)
    gathered = feat[jnp.clip(idx, 0, feat.shape[0] - 1)]         # (N,H,W,K,C)
    gathered = jnp.where((idx >= 0)[..., None], gathered, 0.0)
    ones = jnp.ones_like(alpha[..., :1])
    cum = jnp.cumprod(
        jnp.concatenate([ones, 1.0 - alpha[..., :-1]], axis=-1), axis=-1)
    return jnp.sum((alpha * cum)[..., None] * gathered, axis=-2)


if __name__ == "__main__":
    # No learned parameters in this module; the "parameters" are the raster
    # settings (radius, image_size, points_per_pixel) and the injected
    # compositor choice (AlphaCompositor).
    N, P, C = 2, 128, 4
    image_size, radius, K = 16, 0.25, 8

    key = jax.random.PRNGKey(0)
    k1, k2, k3 = jax.random.split(key, 3)
    xy = jax.random.uniform(k1, (N, P, 2), minval=-0.9, maxval=0.9)
    z = jax.random.uniform(k2, (N, P, 1), minval=0.5, maxval=2.0)
    points = jnp.concatenate([xy, z], axis=-1).astype(jnp.float32)
    features_packed = jax.random.uniform(k3, (N * P, C), dtype=jnp.float32)

    rgb, zbuf, idx = points_renderer_forward(
        points, features_packed,
        image_size=image_size, radius=radius, points_per_pixel=K)
    jax.block_until_ready((rgb, zbuf, idx))

    assert rgb.shape == (N, image_size, image_size, 3)
    assert zbuf.shape == (N, image_size, image_size, K)
    assert idx.shape == (N, image_size, image_size, K)

    # Validate the Pallas compositor against the plain-JAX reference.
    _, _, dists_chk = simple_rasterize(points, image_size, radius, K)
    ref = composite_ref(idx, dists_chk, features_packed, radius)[..., :3]
    assert jnp.allclose(rgb, ref, atol=1e-5, rtol=1e-5), "mismatch vs reference"

    print("KERNEL_OK")
</pallas_src>

<mosaic_0001>
module attributes {stable_mosaic.version = 11 : i64} {
  func.func @_composite_kernel(%arg0: i32, %arg1: memref<8x512xi32, #tpu.memory_space<vmem>>, %arg2: memref<8x512xf32, #tpu.memory_space<vmem>>, %arg3: memref<8x3x512xf32, #tpu.memory_space<vmem>>, %arg4: memref<3x512xf32, #tpu.memory_space<vmem>>) attributes {dimension_semantics = [#tpu.dimension_semantics<parallel>], iteration_bounds = array<i64: 1>, scalar_prefetch = 0 : i64, scratch_operands = 0 : i64, tpu.core_type = #tpu.core_type<tc>, window_params = [{transform_indices = @transform_0, window_bounds = array<i64: 8, 512>}, {transform_indices = @transform_1, window_bounds = array<i64: 8, 512>}, {transform_indices = @transform_2, window_bounds = array<i64: 8, 3, 512>}, {transform_indices = @transform_3, window_bounds = array<i64: 3, 512>}]} {
    %c0 = arith.constant 0 : index
    %c0_0 = arith.constant 0 : index
    %0 = vector.load %arg1[%c0, %c0_0] : memref<8x512xi32, #tpu.memory_space<vmem>>, vector<8x512xi32>
    %c0_1 = arith.constant 0 : index
    %c0_2 = arith.constant 0 : index
    %1 = vector.load %arg2[%c0_1, %c0_2] : memref<8x512xf32, #tpu.memory_space<vmem>>, vector<8x512xf32>
    %c0_i32 = arith.constant 0 : i32
    %2 = vector.broadcast %c0_i32 : i32 to vector<8x512xi32>
    %3 = arith.cmpi sge, %0, %2 : vector<8x512xi32>
    %cst = arith.constant 1.600000e+01 : f32
    %4 = vector.broadcast %cst : f32 to vector<8x512xf32>
    %5 = arith.mulf %1, %4 : vector<8x512xf32>
    %cst_3 = arith.constant 1.000000e+00 : f32
    %6 = vector.broadcast %cst_3 : f32 to vector<8x512xf32>
    %7 = arith.subf %6, %5 : vector<8x512xf32>
    %cst_4 = arith.constant 0.000000e+00 : f32
    %8 = vector.broadcast %cst_4 : f32 to vector<8x512xf32>
    %9 = arith.select %3, %7, %8 : vector<8x512xi1>, vector<8x512xf32>
    %cst_5 = arith.constant 1.000000e+00 : f32
    %10 = vector.broadcast %cst_5 : f32 to vector<1x512xf32>
    %cst_6 = arith.constant 0.000000e+00 : f32
    %11 = vector.broadcast %cst_6 : f32 to vector<3x512xf32>
    %12 = vector.extract_strided_slice %9 {offsets = [0, 0], sizes = [1, 512], strides = [1, 1]} : vector<8x512xf32> to vector<1x512xf32>
    %c0_7 = arith.constant 0 : index
    %c0_8 = arith.constant 0 : index
    %c0_9 = arith.constant 0 : index
    %13 = vector.load %arg3[%c0_7, %c0_8, %c0_9] : memref<8x3x512xf32, #tpu.memory_space<vmem>>, vector<1x3x512xf32>
    %14 = vector.shape_cast %13 : vector<1x3x512xf32> to vector<3x512xf32>
    %15 = arith.mulf %10, %12 : vector<1x512xf32>
    %16 = vector.broadcast %15 : vector<1x512xf32> to vector<3x512xf32>
    %17 = arith.mulf %16, %14 : vector<3x512xf32>
    %18 = arith.addf %11, %17 : vector<3x512xf32>
    %cst_10 = arith.constant 1.000000e+00 : f32
    %19 = vector.broadcast %cst_10 : f32 to vector<1x512xf32>
    %20 = arith.subf %19, %12 : vector<1x512xf32>
    %21 = arith.mulf %10, %20 : vector<1x512xf32>
    %22 = vector.extract_strided_slice %9 {offsets = [1, 0], sizes = [1, 512], strides = [1, 1]} : vector<8x512xf32> to vector<1x512xf32>
    %c1 = arith.constant 1 : index
    %c0_11 = arith.constant 0 : index
    %c0_12 = arith.constant 0 : index
    %23 = vector.load %arg3[%c1, %c0_11, %c0_12] : memref<8x3x512xf32, #tpu.memory_space<vmem>>, vector<1x3x512xf32>
    %24 = vector.shape_cast %23 : vector<1x3x512xf32> to vector<3x512xf32>
    %25 = arith.mulf %21, %22 : vector<1x512xf32>
    %26 = vector.broadcast %25 : vector<1x512xf32> to vector<3x512xf32>
    %27 = arith.mulf %26, %24 : vector<3x512xf32>
    %28 = arith.addf %18, %27 : vector<3x512xf32>
    %cst_13 = arith.constant 1.000000e+00 : f32
    %29 = vector.broadcast %cst_13 : f32 to vector<1x512xf32>
    %30 = arith.subf %29, %22 : vector<1x512xf32>
    %31 = arith.mulf %21, %30 : vector<1x512xf32>
    %32 = vector.extract_strided_slice %9 {offsets = [2, 0], sizes = [1, 512], strides = [1, 1]} : vector<8x512xf32> to vector<1x512xf32>
    %c2 = arith.constant 2 : index
    %c0_14 = arith.constant 0 : index
    %c0_15 = arith.constant 0 : index
    %33 = vector.load %arg3[%c2, %c0_14, %c0_15] : memref<8x3x512xf32, #tpu.memory_space<vmem>>, vector<1x3x512xf32>
    %34 = vector.shape_cast %33 : vector<1x3x512xf32> to vector<3x512xf32>
    %35 = arith.mulf %31, %32 : vector<1x512xf32>
    %36 = vector.broadcast %35 : vector<1x512xf32> to vector<3x512xf32>
    %37 = arith.mulf %36, %34 : vector<3x512xf32>
    %38 = arith.addf %28, %37 : vector<3x512xf32>
    %cst_16 = arith.constant 1.000000e+00 : f32
    %39 = vector.broadcast %cst_16 : f32 to vector<1x512xf32>
    %40 = arith.subf %39, %32 : vector<1x512xf32>
    %41 = arith.mulf %31, %40 : vector<1x512xf32>
    %42 = vector.extract_strided_slice %9 {offsets = [3, 0], sizes = [1, 512], strides = [1, 1]} : vector<8x512xf32> to vector<1x512xf32>
    %c3 = arith.constant 3 : index
    %c0_17 = arith.constant 0 : index
    %c0_18 = arith.constant 0 : index
    %43 = vector.load %arg3[%c3, %c0_17, %c0_18] : memref<8x3x512xf32, #tpu.memory_space<vmem>>, vector<1x3x512xf32>
    %44 = vector.shape_cast %43 : vector<1x3x512xf32> to vector<3x512xf32>
    %45 = arith.mulf %41, %42 : vector<1x512xf32>
    %46 = vector.broadcast %45 : vector<1x512xf32> to vector<3x512xf32>
    %47 = arith.mulf %46, %44 : vector<3x512xf32>
    %48 = arith.addf %38, %47 : vector<3x512xf32>
    %cst_19 = arith.constant 1.000000e+00 : f32
    %49 = vector.broadcast %cst_19 : f32 to vector<1x512xf32>
    %50 = arith.subf %49, %42 : vector<1x512xf32>
    %51 = arith.mulf %41, %50 : vector<1x512xf32>
    %52 = vector.extract_strided_slice %9 {offsets = [4, 0], sizes = [1, 512], strides = [1, 1]} : vector<8x512xf32> to vector<1x512xf32>
    %c4 = arith.constant 4 : index
    %c0_20 = arith.constant 0 : index
    %c0_21 = arith.constant 0 : index
    %53 = vector.load %arg3[%c4, %c0_20, %c0_21] : memref<8x3x512xf32, #tpu.memory_space<vmem>>, vector<1x3x512xf32>
    %54 = vector.shape_cast %53 : vector<1x3x512xf32> to vector<3x512xf32>
    %55 = arith.mulf %51, %52 : vector<1x512xf32>
    %56 = vector.broadcast %55 : vector<1x512xf32> to vector<3x512xf32>
    %57 = arith.mulf %56, %54 : vector<3x512xf32>
    %58 = arith.addf %48, %57 : vector<3x512xf32>
    %cst_22 = arith.constant 1.000000e+00 : f32
    %59 = vector.broadcast %cst_22 : f32 to vector<1x512xf32>
    %60 = arith.subf %59, %52 : vector<1x512xf32>
    %61 = arith.mulf %51, %60 : vector<1x512xf32>
    %62 = vector.extract_strided_slice %9 {offsets = [5, 0], sizes = [1, 512], strides = [1, 1]} : vector<8x512xf32> to vector<1x512xf32>
    %c5 = arith.constant 5 : index
    %c0_23 = arith.constant 0 : index
    %c0_24 = arith.constant 0 : index
    %63 = vector.load %arg3[%c5, %c0_23, %c0_24] : memref<8x3x512xf32, #tpu.memory_space<vmem>>, vector<1x3x512xf32>
    %64 = vector.shape_cast %63 : vector<1x3x512xf32> to vector<3x512xf32>
    %65 = arith.mulf %61, %62 : vector<1x512xf32>
    %66 = vector.broadcast %65 : vector<1x512xf32> to vector<3x512xf32>
    %67 = arith.mulf %66, %64 : vector<3x512xf32>
    %68 = arith.addf %58, %67 : vector<3x512xf32>
    %cst_25 = arith.constant 1.000000e+00 : f32
    %69 = vector.broadcast %cst_25 : f32 to vector<1x512xf32>
    %70 = arith.subf %69, %62 : vector<1x512xf32>
    %71 = arith.mulf %61, %70 : vector<1x512xf32>
    %72 = vector.extract_strided_slice %9 {offsets = [6, 0], sizes = [1, 512], strides = [1, 1]} : vector<8x512xf32> to vector<1x512xf32>
    %c6 = arith.constant 6 : index
    %c0_26 = arith.constant 0 : index
    %c0_27 = arith.constant 0 : index
    %73 = vector.load %arg3[%c6, %c0_26, %c0_27] : memref<8x3x512xf32, #tpu.memory_space<vmem>>, vector<1x3x512xf32>
    %74 = vector.shape_cast %73 : vector<1x3x512xf32> to vector<3x512xf32>
    %75 = arith.mulf %71, %72 : vector<1x512xf32>
    %76 = vector.broadcast %75 : vector<1x512xf32> to vector<3x512xf32>
    %77 = arith.mulf %76, %74 : vector<3x512xf32>
    %78 = arith.addf %68, %77 : vector<3x512xf32>
    %cst_28 = arith.constant 1.000000e+00 : f32
    %79 = vector.broadcast %cst_28 : f32 to vector<1x512xf32>
    %80 = arith.subf %79, %72 : vector<1x512xf32>
    %81 = arith.mulf %71, %80 : vector<1x512xf32>
    %82 = vector.extract_strided_slice %9 {offsets = [7, 0], sizes = [1, 512], strides = [1, 1]} : vector<8x512xf32> to vector<1x512xf32>
    %c7 = arith.constant 7 : index
    %c0_29 = arith.constant 0 : index
    %c0_30 = arith.constant 0 : index
    %83 = vector.load %arg3[%c7, %c0_29, %c0_30] : memref<8x3x512xf32, #tpu.memory_space<vmem>>, vector<1x3x512xf32>
    %84 = vector.shape_cast %83 : vector<1x3x512xf32> to vector<3x512xf32>
    %85 = arith.mulf %81, %82 : vector<1x512xf32>
    %86 = vector.broadcast %85 : vector<1x512xf32> to vector<3x512xf32>
    %87 = arith.mulf %86, %84 : vector<3x512xf32>
    %88 = arith.addf %78, %87 : vector<3x512xf32>
    %c0_31 = arith.constant 0 : index
    %c0_32 = arith.constant 0 : index
    %89 = vector.load %arg4[%c0_31, %c0_32] : memref<3x512xf32, #tpu.memory_space<vmem>>, vector<3x512xf32>
    tpu.vector_store %arg4[%c0_31, %c0_32], %88 {strides = array<i32>} : memref<3x512xf32, #tpu.memory_space<vmem>>, vector<3x512xf32>,
    return
  }
  func.func @transform_0(%arg0: i32) -> (i32, i32) {
    %c0_i32 = arith.constant 0 : i32
    %c0_i32_0 = arith.constant 0 : i32
    return %c0_i32, %arg0 : i32, i32
  }
  func.func @transform_1(%arg0: i32) -> (i32, i32) {
    %c0_i32 = arith.constant 0 : i32
    %c0_i32_0 = arith.constant 0 : i32
    return %c0_i32, %arg0 : i32, i32
  }
  func.func @transform_2(%arg0: i32) -> (i32, i32, i32) {
    %c0_i32 = arith.constant 0 : i32
    %c0_i32_0 = arith.constant 0 : i32
    %c0_i32_1 = arith.constant 0 : i32
    return %c0_i32, %c0_i32_0, %arg0 : i32, i32, i32
  }
  func.func @transform_3(%arg0: i32) -> (i32, i32) {
    %c0_i32 = arith.constant 0 : i32
    %c0_i32_0 = arith.constant 0 : i32
    return %c0_i32, %arg0 : i32, i32
  }
}

</mosaic_0001>

<bundles_post_ra>
// kernel: tpu_custom_call.1
= control target key start
LH: loop header
LB: loop body
LE: loop exit
PB: predicated region body
PF: predicated region fallthrough
CT: control target
= control target key end

     0   :  { %8 = vsyncpa [#allocation3], 0  ;;  %v41_v2 = vlaneseq  ;;  %s775_s0 = inlined_call_operand.vmem [shape: s32[8,512], index: 0, kind: input, shape index: {}]   ;;  %s776_s1 = inlined_call_operand.vmem [shape: f32[8,512], index: 1, kind: input, shape index: {}]   ;;  %s777_s2 = inlined_call_operand.vmem [shape: f32[8,3,512], index: 2, kind: input, shape index: {}]   ;;  %s778_s3 = inlined_call_operand.hbm [shape: f32[3,512], index: 3, kind: output, shape index: {}]  }
   0x1   :  { %v15_v0 = vld [vmem:[%s775_s0] sm:$0xff]  ;;  %v16_v1 = vld [vmem:[%s775_s0 + $0x8] sm:$0xff]  ;;  %v17_v3 = vld [vmem:[%s775_s0 + $0x10] sm:$0xff] }
   0x2   :  { %v18_v4 = vld [vmem:[%s775_s0 + $0x18] sm:$0xff]  ;;  %v19_v5 = vld [vmem:[%s776_s1] sm:$0xff]  ;;  %vm23_vm0 = vcmp.ge.s32.totalorder %v15_v0, 0  ;;  %v20_v6 = vld [vmem:[%s776_s1 + $0x8] sm:$0xff]  ;;  %vm24_vm1 = vcmp.ge.s32.totalorder %v16_v1, 0  ;;  %vm25_vm2 = vcmp.ge.s32.totalorder %v17_v3, 0 }
   0x3   :  { %v21_v7 = vld [vmem:[%s776_s1 + $0x10] sm:$0xff]  ;;  %v22_v8 = vld [vmem:[%s776_s1 + $0x18] sm:$0xff]  ;;  %v27_v9 = vmul.f32 16.0, %v19_v5  ;;  %v28_v10 = vmul.f32 16.0, %v20_v6  ;;  %v39_v13 = vld [vmem:[%s777_s2] sm:$0x77] }
   0x4   :  { %v29_v11 = vmul.f32 16.0, %v21_v7  ;;  %v30_v12 = vmul.f32 16.0, %v22_v8  ;;  %v42_v14 = vshrl.u32 %v41_v2, 7  ;;  %vm26_vm3 = vcmp.ge.s32.totalorder %v18_v4, 0  ;;  %v40_v16 = vld [vmem:[%s777_s2 + $0x8] sm:$0x77] }
   0x5   :  { %v31_v15 = vsub.f32 1.0, %v27_v9  ;;  %v494_v17 = vld [vmem:[%s777_s2 + $0x10] sm:$0x77]  ;;  %v32_v18 = vsub.f32 1.0, %v28_v10  ;;  %v495_v22 = vld [vmem:[%s777_s2 + $0x18] sm:$0x77]  ;;  %v59_v24 = vcombine.high %v39_v13, %v39_v13  ;;  %v60_v29 = vcombine.high %v40_v16, %v40_v16 }
   0x6   :  { %v33_v19 = vsub.f32 1.0, %v29_v11  ;;  %v34_v20 = vsub.f32 1.0, %v30_v12  ;;  %v603_v21 = vsub.s32 0, %v42_v14  ;;  %v112_v31 = vcombine.high %v494_v17, %v494_v17  ;;  %v496_v3 = vld [vmem:[%s777_s2 + $0x20] sm:$0x77] }
   0x7   :  { %v609_v23 = vsel %vm23_vm0, %v31_v15, 0.0  ;;  %v612_v25 = vsel %vm24_vm1, %v32_v18, 0.0  ;;  %v113_v32 = vcombine.high %v495_v22, %v495_v22  ;;  %v497_v11 = vld [vmem:[%s777_s2 + $0x28] sm:$0x77]  ;;  %v173_v18 = vcombine.high %v496_v3, %v496_v3 }
   0x8   :  { %v615_v26 = vsel %vm25_vm2, %v33_v19, 0.0  ;;  %v617_v27 = vsel %vm26_vm3, %v34_v20, 0.0  ;;  %v44_v28 = vrot.slane %v609_v23, %v603_v21  ;;  %v622_v30 = vsub.f32 1.0, %v609_v23 }
   0x9   :  { %v48_v33 = vrot.slane %v612_v25, %v603_v21  ;;  %v627_v34 = vsub.f32 1.0, %v612_v25  ;;  %v630_v35 = vsub.f32 1.0, %v615_v26  ;;  %v633_v36 = vsub.f32 1.0, %v617_v27 }
   0xa   :  { %v52_v37 = vrot.slane %v615_v26, %v603_v21  ;;  %v56_v38 = vrot.slane %v617_v27, %v603_v21  ;;  %v63_v39 = vmul.f32 %v44_v28, %v39_v13  ;;  %v82_v40 = vrot.slane %v609_v23, 1 }
   0xb   :  { %v83_v41 = vrot.slane %v612_v25, 1  ;;  %v84_v42 = vrot.slane %v615_v26, 1  ;;  %v85_v43 = vrot.slane %v617_v27, 1  ;;  %v128_v44 = vrot.slane %v622_v30, 1 }
   0xc   :  { %v90_v45 = vmul.f32 %v82_v40, %v622_v30  ;;  %v129_v46 = vrot.slane %v627_v34, 1  ;;  %v130_v47 = vrot.slane %v630_v35, 1  ;;  %v131_v48 = vrot.slane %v633_v36, 1 }
   0xd   :  { %v91_v49 = vmul.f32 %v83_v41, %v627_v34  ;;  %v92_v50 = vmul.f32 %v84_v42, %v630_v35  ;;  %v93_v51 = vmul.f32 %v85_v43, %v633_v36  ;;  %v136_v52 = vmul.f32 %v128_v44, %v622_v30 }
   0xe   :  { %v97_v53 = vrot.slane %v90_v45, %v603_v21  ;;  %v137_v54 = vmul.f32 %v129_v46, %v627_v34  ;;  %v138_v55 = vmul.f32 %v130_v47, %v630_v35  ;;  %v139_v56 = vmul.f32 %v131_v48, %v633_v36  ;;  %v498_v47 = vld [vmem:[%s777_s2 + $0x30] sm:$0x77] }
   0xf   :  { %v101_v57 = vrot.slane %v91_v49, %v603_v21  ;;  %v105_v58 = vrot.slane %v92_v50, %v603_v21  ;;  %v109_v59 = vrot.slane %v93_v51, %v603_v21  ;;  %v143_v60 = vrot.slane %v609_v23, 2 }
  0x10   :  { %v116_v61 = vmul.f32 %v494_v17, %v97_v53  ;;  %v144_v62 = vrot.slane %v612_v25, 2  ;;  %v145_v63 = vrot.slane %v615_v26, 2  ;;  %v146_v0 = vrot.slane %v617_v27, 2 }
  0x11   :  { %v151_v1 = vmul.f32 %v143_v60, %v136_v52  ;;  %v64_v2 = vmul.f32 %v59_v24, %v48_v33  ;;  %v65_v7 = vmul.f32 %v52_v37, %v40_v16  ;;  %v66_v8 = vmul.f32 %v60_v29, %v56_v38 }
  0x12   :  { %v152_v4 = vmul.f32 %v144_v62, %v137_v54  ;;  %v153_v5 = vmul.f32 %v145_v63, %v138_v55  ;;  %v154_v6 = vmul.f32 %v146_v0, %v139_v56  ;;  %v117_v9 = vmul.f32 %v112_v31, %v101_v57 }
  0x13   :  { %v118_v10 = vmul.f32 %v495_v22, %v105_v58  ;;  %v119_v12 = vmul.f32 %v113_v32, %v109_v59  ;;  %v120_v13 = vadd.f32 %v116_v61, %v63_v39  ;;  %v158_v14 = vrot.slane %v151_v1, %v603_v21 }
  0x14   :  { %v162_v15 = vrot.slane %v152_v4, %v603_v21  ;;  %v166_v17 = vrot.slane %v153_v5, %v603_v21  ;;  %v185_v19 = vrot.slane %v622_v30, 2  ;;  %v186_v16 = vrot.slane %v627_v34, 2 }
  0x15   :  { %v170_v20 = vrot.slane %v154_v6, %v603_v21  ;;  %v174_v22 = vcombine.high %v497_v11, %v497_v11  ;;  %v187_v24 = vrot.slane %v630_v35, 2  ;;  %v188_v28 = vrot.slane %v633_v36, 2 }
  0x16   :  { %v121_v29 = vadd.f32 %v117_v9, %v64_v2  ;;  %v122_v31 = vadd.f32 %v118_v10, %v65_v7  ;;  %v193_v32 = vmul.f32 %v185_v19, %v136_v52  ;;  %v194_v33 = vmul.f32 %v186_v16, %v137_v54  ;;  %v499_v54 = vld [vmem:[%s777_s2 + $0x38] sm:$0x77] }
  0x17   :  { %v123_v37 = vadd.f32 %v119_v12, %v66_v8  ;;  %v177_v38 = vmul.f32 %v496_v3, %v158_v14  ;;  %v195_v39 = vmul.f32 %v187_v24, %v138_v55  ;;  %v196_v40 = vmul.f32 %v188_v28, %v139_v56 }
  0x18   :  { %v178_v41 = vmul.f32 %v173_v18, %v162_v15  ;;  %v200_v42 = vrot.slane %v609_v23, 3  ;;  %v201_v43 = vrot.slane %v612_v25, 3  ;;  %v202_v44 = vrot.slane %v615_v26, 3  ;;  %v500_v15 = vld [vmem:[%s777_s2 + $0x40] sm:$0x77] }
  0x19   :  { %v179_v45 = vmul.f32 %v497_v11, %v166_v17  ;;  %v180_v46 = vmul.f32 %v174_v22, %v170_v20  ;;  %v203_v48 = vrot.slane %v617_v27, 3  ;;  %v242_v49 = vrot.slane %v622_v30, 3 }
  0x1a   :  { %v208_v50 = vmul.f32 %v200_v42, %v193_v32  ;;  %v209_v51 = vmul.f32 %v201_v43, %v194_v33  ;;  %v210_v52 = vmul.f32 %v202_v44, %v195_v39  ;;  %v243_v53 = vrot.slane %v627_v34, 3 }
  0x1b   :  { %v211_v55 = vmul.f32 %v203_v48, %v196_v40  ;;  %v244_v56 = vrot.slane %v630_v35, 3  ;;  %v245_v57 = vrot.slane %v633_v36, 3  ;;  %v250_v58 = vmul.f32 %v242_v49, %v193_v32 }
  0x1c   :  { %v215_v59 = vrot.slane %v208_v50, %v603_v21  ;;  %v219_v60 = vrot.slane %v209_v51, %v603_v21  ;;  %v230_v61 = vcombine.high %v498_v47, %v498_v47  ;;  %v251_v62 = vmul.f32 %v243_v53, %v194_v33 }
  0x1d   :  { %v223_v63 = vrot.slane %v210_v52, %v603_v21  ;;  %v252_v0 = vmul.f32 %v244_v56, %v195_v39  ;;  %v253_v1 = vmul.f32 %v245_v57, %v196_v40  ;;  %v257_v2 = vrot.slane %v609_v23, 4  ;;  %v502_v56 = vld [vmem:[%s777_s2 + $0x50] sm:$0x77] }
  0x1e   :  { %v181_v3 = vadd.f32 %v177_v38, %v120_v13  ;;  %v227_v4 = vrot.slane %v211_v55, %v603_v21  ;;  %v231_v5 = vcombine.high %v499_v54, %v499_v54  ;;  %v258_v6 = vrot.slane %v612_v25, 4  ;;  %v501_v13 = vld [vmem:[%s777_s2 + $0x48] sm:$0x77] }
  0x1f   :  { %v182_v7 = vadd.f32 %v178_v41, %v121_v29  ;;  %v259_v8 = vrot.slane %v615_v26, 4  ;;  %v260_v9 = vrot.slane %v617_v27, 4  ;;  %v265_v10 = vmul.f32 %v257_v2, %v250_v58 }
  0x20   :  { %v183_v11 = vadd.f32 %v179_v45, %v122_v31  ;;  %v184_v12 = vadd.f32 %v180_v46, %v123_v37  ;;  %v234_v14 = vmul.f32 %v498_v47, %v215_v59  ;;  %v266_v17 = vmul.f32 %v258_v6, %v251_v62 }
  0x21   :  { %v235_v18 = vmul.f32 %v230_v61, %v219_v60  ;;  %v236_v19 = vmul.f32 %v499_v54, %v223_v63  ;;  %v267_v16 = vmul.f32 %v259_v8, %v252_v0  ;;  %v268_v20 = vmul.f32 %v260_v9, %v253_v1 }
  0x22   :  { %v237_v22 = vmul.f32 %v231_v5, %v227_v4  ;;  %v272_v24 = vrot.slane %v265_v10, %v603_v21  ;;  %v276_v28 = vrot.slane %v266_v17, %v603_v21  ;;  %v299_v29 = vrot.slane %v622_v30, 4 }
  0x23   :  { %v280_v31 = vrot.slane %v267_v16, %v603_v21  ;;  %v287_v32 = vcombine.high %v500_v15, %v500_v15  ;;  %v288_v33 = vcombine.high %v501_v13, %v501_v13  ;;  %v300_v37 = vrot.slane %v627_v34, 4 }
  0x24   :  { %v284_v38 = vrot.slane %v268_v20, %v603_v21  ;;  %v301_v39 = vrot.slane %v630_v35, 4  ;;  %v302_v40 = vrot.slane %v633_v36, 4  ;;  %v307_v41 = vmul.f32 %v299_v29, %v250_v58 }
  0x25   :  { %v238_v42 = vadd.f32 %v234_v14, %v181_v3  ;;  %v239_v43 = vadd.f32 %v235_v18, %v182_v7  ;;  %v240_v44 = vadd.f32 %v236_v19, %v183_v11  ;;  %v308_v45 = vmul.f32 %v300_v37, %v251_v62  ;;  %v504_v19 = vld [vmem:[%s777_s2 + $0x60] sm:$0x77] }
  0x26   :  { %v291_v46 = vmul.f32 %v500_v15, %v272_v24  ;;  %v309_v47 = vmul.f32 %v301_v39, %v252_v0  ;;  %v310_v48 = vmul.f32 %v302_v40, %v253_v1  ;;  %v314_v49 = vrot.slane %v609_v23, 5  ;;  %v503_v0 = vld [vmem:[%s777_s2 + $0x58] sm:$0x77] }
  0x27   :  { %v241_v50 = vadd.f32 %v237_v22, %v184_v12  ;;  %v292_v51 = vmul.f32 %v287_v32, %v276_v28  ;;  %v315_v52 = vrot.slane %v612_v25, 5  ;;  %v316_v53 = vrot.slane %v615_v26, 5 }
  0x28   :  { %v293_v54 = vmul.f32 %v501_v13, %v280_v31  ;;  %v294_v55 = vmul.f32 %v288_v33, %v284_v38  ;;  %v317_v57 = vrot.slane %v617_v27, 5  ;;  %v322_v58 = vmul.f32 %v314_v49, %v307_v41  ;;  %v505_v33 = vld [vmem:[%s777_s2 + $0x68] sm:$0x77] }
  0x29   :  { %v323_v59 = vmul.f32 %v315_v52, %v308_v45  ;;  %v324_v60 = vmul.f32 %v316_v53, %v309_v47  ;;  %v356_v61 = vrot.slane %v622_v30, 5  ;;  %v357_v62 = vrot.slane %v627_v34, 5 }
  0x2a   :  { %v295_v63 = vadd.f32 %v291_v46, %v238_v42  ;;  %v325_v1 = vmul.f32 %v317_v57, %v310_v48  ;;  %v358_v2 = vrot.slane %v630_v35, 5  ;;  %v359_v3 = vrot.slane %v633_v36, 5  ;;  %v506_v57 = vld [vmem:[%s777_s2 + $0x70] sm:$0x77] }
  0x2b   :  { %v329_v4 = vrot.slane %v322_v58, %v603_v21  ;;  %v344_v5 = vcombine.high %v502_v56, %v502_v56  ;;  %v364_v6 = vmul.f32 %v356_v61, %v307_v41  ;;  %v365_v7 = vmul.f32 %v357_v62, %v308_v45 }
  0x2c   :  { %v333_v8 = vrot.slane %v323_v59, %v603_v21  ;;  %v337_v9 = vrot.slane %v324_v60, %v603_v21  ;;  %v366_v10 = vmul.f32 %v358_v2, %v309_v47  ;;  %v367_v11 = vmul.f32 %v359_v3, %v310_v48 }
  0x2d   :  { %v341_v12 = vrot.slane %v325_v1, %v603_v21  ;;  %v345_v14 = vcombine.high %v503_v0, %v503_v0  ;;  %v371_v15 = vrot.slane %v609_v23, 6  ;;  %v372_v13 = vrot.slane %v612_v25, 6 }
  0x2e   :  { %v296_v17 = vadd.f32 %v292_v51, %v239_v43  ;;  %v297_v18 = vadd.f32 %v293_v54, %v240_v44  ;;  %v373_v16 = vrot.slane %v615_v26, 6  ;;  %v374_v20 = vrot.slane %v617_v27, 6 }
  0x2f   :  { %v298_v22 = vadd.f32 %v294_v55, %v241_v50  ;;  %v348_v24 = vmul.f32 %v502_v56, %v329_v4  ;;  %v379_v28 = vmul.f32 %v371_v15, %v364_v6  ;;  %v380_v29 = vmul.f32 %v372_v13, %v365_v7 }
  0x30   :  { %v349_v31 = vmul.f32 %v344_v5, %v333_v8  ;;  %v350_v32 = vmul.f32 %v503_v0, %v337_v9  ;;  %v381_v37 = vmul.f32 %v373_v16, %v366_v10  ;;  %v382_v38 = vmul.f32 %v374_v20, %v367_v11 }
  0x31   :  { %v351_v39 = vmul.f32 %v345_v14, %v341_v12  ;;  %v386_v40 = vrot.slane %v379_v28, %v603_v21  ;;  %v401_v41 = vcombine.high %v504_v19, %v504_v19  ;;  %v413_v42 = vrot.slane %v622_v30, 6 }
  0x32   :  { %v390_v43 = vrot.slane %v380_v29, %v603_v21  ;;  %v394_v44 = vrot.slane %v381_v37, %v603_v21  ;;  %v414_v45 = vrot.slane %v627_v34, 6  ;;  %v415_v46 = vrot.slane %v630_v35, 6 }
  0x33   :  { %v398_v47 = vrot.slane %v382_v38, %v603_v21  ;;  %v402_v48 = vcombine.high %v505_v33, %v505_v33  ;;  %v416_v49 = vrot.slane %v633_v36, 6  ;;  %v421_v50 = vmul.f32 %v413_v42, %v364_v6  ;;  %v507_v36 = vld [vmem:[%s777_s2 + $0x78] sm:$0x77]  ;;  %s549_s2 = smov [#allocation2]  }
  0x34   :  { %v352_v51 = vadd.f32 %v348_v24, %v295_v63  ;;  %v353_v52 = vadd.f32 %v349_v31, %v296_v17  ;;  %v422_v53 = vmul.f32 %v414_v45, %v365_v7  ;;  %v423_v54 = vmul.f32 %v415_v46, %v366_v10  ;;  %s486_s30 = sshll.u32 %s549_s2, 4  ;;  %s487_s30 = int_to_ptr.vmem [resolvable:$true] %s486_s30 }
  0x35   :  { %v354_v55 = vadd.f32 %v350_v32, %v297_v18  ;;  %v405_v30 = vmul.f32 %v504_v19, %v386_v40  ;;  %v424_v56 = vmul.f32 %v416_v49, %v367_v11  ;;  %v428_v34 = vrot.slane %v609_v23, 7  ;;  %s525_s4 = scalar_lea.vmem %s487_s30, 256  ;;  %p530_p1 = scmp.lt.s32.totalorder %s487_s30, %s487_s30 }
  0x36   :  { %v406_v35 = vmul.f32 %v401_v41, %v390_v43  ;;  %v407_v58 = vmul.f32 %v505_v33, %v394_v44  ;;  %v429_v59 = vrot.slane %v612_v25, 7  ;;  %v430_v60 = vrot.slane %v615_v26, 7  ;;  %p526_p0 = scmp.ne.s32.totalorder %s487_s30, %s525_s4  ;;  %p531_p2 = scmp.lt.s32.totalorder %s525_s4, %s525_s4 }
  0x37   :  { %v355_v61 = vadd.f32 %v351_v39, %v298_v22  ;;  %v408_v62 = vmul.f32 %v402_v48, %v398_v47  ;;  %v431_v63 = vrot.slane %v617_v27, 7  ;;  %v436_v0 = vmul.f32 %v428_v34, %v421_v50 }
  0x38   :  { %v437_v1 = vmul.f32 %v429_v59, %v422_v53  ;;  %v438_v2 = vmul.f32 %v430_v60, %v423_v54  ;;  %v458_v3 = vcombine.high %v506_v57, %v506_v57  ;;  %v409_v4 = vadd.f32 %v405_v30, %v352_v51  ;;  %p532_p3 = por %p531_p2, %p530_p1 }
  0x39   :  { %v439_v23 = vmul.f32 %v431_v63, %v424_v56  ;;  %v443_v5 = vrot.slane %v436_v0, %v603_v21  ;;  %v459_v6 = vcombine.high %v507_v36, %v507_v36  ;;  %v410_v7 = vadd.f32 %v406_v35, %v353_v52 }
  0x3a   :  { %v411_v8 = vadd.f32 %v407_v58, %v354_v55  ;;  %v447_v9 = vrot.slane %v437_v1, %v603_v21  ;;  %v451_v25 = vrot.slane %v438_v2, %v603_v21  ;;  %v412_v26 = vadd.f32 %v408_v62, %v355_v61  ;;  %p533_p4 = pnand %p532_p3, %p526_p0 }
  0x3b   :  { %v455_v10 = vrot.slane %v439_v23, %v603_v21  ;;  %v462_v11 = vmul.f32 %v506_v57, %v443_v5 }
  0x3c   :  { %v463_v27 = vmul.f32 %v458_v3, %v447_v9  ;;  %v464_v12 = vmul.f32 %v507_v36, %v451_v25 }
  0x3d   :  { %v465_v14 = vmul.f32 %v459_v6, %v455_v10  ;;  %v466_v15 = vadd.f32 %v462_v11, %v409_v4 }
  0x3e   :  { %v467_v13 = vadd.f32 %v463_v27, %v410_v7  ;;  %v468_v17 = vadd.f32 %v464_v12, %v411_v8 }
  0x3f   :  { %v469_v18 = vadd.f32 %v465_v14, %v412_v26 }
  0x40   :  { %v474_v19 = vcombine.low %v466_v15, %v467_v13 }
  0x41   :  { %v475_v16 = vcombine.low %v468_v17, %v469_v18 }
  0x42   :  { %478 = vst [vmem:[#allocation2] sm:$0x77] %v474_v19 }
  0x43   :  { %479 = vst [vmem:[#allocation2 + $0x8] sm:$0x77] %v475_v16 }
  0x44   :  { %536 = shalt.err (!%p533_p4)
}
  0x45   :  { %s537_s6 = scalar_lea.hbm %s778_s3, 256 }
  0x46   :  { %p538_p5 = scmp.ne.s32.totalorder %s778_s3, %s537_s6  ;;  %p541_p6 = scmp.lt.u32.totalorder %s537_s6, %s778_s3 }
  0x48   :  { %p543_p7 = pnand %p541_p6, %p538_p5 }
  0x4a   :  { %546 = shalt.err (!%p543_p7)
}
  0x4b   :  { %489 = dma.vmem_to_hbm [thread:$0]  %s487_s30, 256, %s778_s3, [#allocation3]  }
  0x4c   :  { %547 = dma.done.wait [#allocation3], 256  }
  0x4d   :  { %548 = vsyncadd [#allocation3], 4294967040 }
  0x4e   :  { %493 = vsyncpa [#allocation3], 1 }

</bundles_post_ra>
